<compile_context>
chip_gen: v7x
topology: tpu7x:2x2x1
jax: 0.10.0
libtpu: 0.0.40
codegen_flags: <defaults>
</compile_context>

<pallas_src>
import functools
import math

import jax
import jax.numpy as jnp
from jax.experimental import pallas as pl
from jax.experimental.pallas import tpu as pltpu


# ---------------------------------------------------------------------------
# Fused FFN-layer kernel: linear1 + relu + linear2 + residual + LayerNorm
# ---------------------------------------------------------------------------
def _ffn_layer_kernel(tgt_ref, w1_ref, b1_ref, w2_ref, b2_ref,
                      gamma_ref, beta_ref, out_ref, *, normalize_before):
    f32 = jnp.float32
    x = tgt_ref[...].astype(f32)                       # (T, D)

    def layer_norm(y):
        mean = jnp.mean(y, axis=-1, keepdims=True)
        c = y - mean
        var = jnp.mean(c * c, axis=-1, keepdims=True)
        # rsqrt goes to the EUP (own VLIW slot) instead of a VALU divide chain
        return c * jax.lax.rsqrt(var + 1e-5) * gamma_ref[...] + beta_ref[...]

    def ffn(y):
        # linear1: y @ W1.T + b1  (PyTorch nn.Linear: W1 is (F, D))
        h = jax.lax.dot_general(y, w1_ref[...],
                                (((1,), (1,)), ((), ())),
                                preferred_element_type=f32)
        h = jnp.maximum(h + b1_ref[...], 0.0)          # relu; dropout(p=0) = identity
        # linear2: h @ W2.T + b2  (W2 is (D, F))
        z = jax.lax.dot_general(h, w2_ref[...],
                                (((1,), (1,)), ((), ())),
                                preferred_element_type=f32)
        return z + b2_ref[...]

    if normalize_before:                               # forward_pre
        out = x + ffn(layer_norm(x))
    else:                                              # forward_post (module default)
        out = layer_norm(x + ffn(x))

    out_ref[...] = out.astype(out_ref.dtype)


def ffn_layer(tgt, params, *, normalize_before=False):
    """FFNLayer.forward. tgt: (L, N, D) like the PyTorch (seq, batch, d_model)."""
    L, N, D = tgt.shape
    tgt2d = tgt.reshape(L * N, D)                      # free layout plumbing
    kernel = functools.partial(_ffn_layer_kernel, normalize_before=normalize_before)
    vmem = pl.BlockSpec(memory_space=pltpu.MemorySpace.VMEM)
    out2d = pl.pallas_call(
        kernel,
        out_shape=jax.ShapeDtypeStruct((L * N, D), jnp.float32),
        in_specs=[vmem] * 7,
        out_specs=vmem,
    )(tgt2d,
      params["w1"], params["b1"],
      params["w2"], params["b2"],
      params["gamma"], params["beta"])
    return out2d.reshape(L, N, D)


# ---------------------------------------------------------------------------
# Parameter init (mirrors the PyTorch module: xavier_uniform on 2-D weights,
# nn.Linear default biases left at zero for determinism, LN gamma=1 / beta=0)
# ---------------------------------------------------------------------------
def _xavier_uniform(key, shape):
    fan_out, fan_in = shape
    bound = math.sqrt(6.0 / (fan_in + fan_out))
    return jax.random.uniform(key, shape, jnp.float32, -bound, bound)


def init_ffn_params(key, d_model, dim_feedforward):
    k1, k2 = jax.random.split(key)
    return {
        "w1": _xavier_uniform(k1, (dim_feedforward, d_model)),   # linear1.weight
        "b1": jnp.zeros((1, dim_feedforward), jnp.float32),      # linear1.bias
        "w2": _xavier_uniform(k2, (d_model, dim_feedforward)),   # linear2.weight
        "b2": jnp.zeros((1, d_model), jnp.float32),              # linear2.bias
        "gamma": jnp.ones((1, d_model), jnp.float32),            # norm.weight
        "beta": jnp.zeros((1, d_model), jnp.float32),            # norm.bias
    }


if __name__ == "__main__":
    d_model = 32
    dim_feedforward = 64
    seq_len = 8
    batch = 2

    key = jax.random.PRNGKey(0)
    k_params, k_tgt = jax.random.split(key)

    params = init_ffn_params(k_params, d_model, dim_feedforward)
    tgt = jax.random.normal(k_tgt, (seq_len, batch, d_model), jnp.float32)

    out = ffn_layer(tgt, params, normalize_before=False)
    out = jax.block_until_ready(out)

    assert out.shape == (seq_len, batch, d_model), out.shape
    assert bool(jnp.all(jnp.isfinite(out)))

    # quick sanity check against a pure-JAX reference of forward_post
    x2d = tgt.reshape(-1, d_model)
    h = jnp.maximum(x2d @ params["w1"].T + params["b1"], 0.0)
    y = x2d + (h @ params["w2"].T + params["b2"])
    mean = y.mean(-1, keepdims=True)
    var = ((y - mean) ** 2).mean(-1, keepdims=True)
    ref = ((y - mean) / jnp.sqrt(var + 1e-5)) * params["gamma"] + params["beta"]
    assert jnp.allclose(out.reshape(-1, d_model), ref, atol=1e-5, rtol=1e-5)

    print("KERNEL_OK")
</pallas_src>

<mosaic_0001>
module attributes {stable_mosaic.version = 11 : i64} {
  func.func @_ffn_layer_kernel(%arg0: memref<16x32xf32, #tpu.memory_space<vmem>>, %arg1: memref<64x32xf32, #tpu.memory_space<vmem>>, %arg2: memref<1x64xf32, #tpu.memory_space<vmem>>, %arg3: memref<32x64xf32, #tpu.memory_space<vmem>>, %arg4: memref<1x32xf32, #tpu.memory_space<vmem>>, %arg5: memref<1x32xf32, #tpu.memory_space<vmem>>, %arg6: memref<1x32xf32, #tpu.memory_space<vmem>>, %arg7: memref<16x32xf32, #tpu.memory_space<vmem>>) attributes {dimension_semantics = [], scalar_prefetch = 0 : i64, scratch_operands = 0 : i64, tpu.core_type = #tpu.core_type<tc>} {
    %c0 = arith.constant 0 : index
    %c0_0 = arith.constant 0 : index
    %0 = vector.load %arg0[%c0, %c0_0] : memref<16x32xf32, #tpu.memory_space<vmem>>, vector<16x32xf32>
    %c0_1 = arith.constant 0 : index
    %c0_2 = arith.constant 0 : index
    %1 = vector.load %arg1[%c0_1, %c0_2] : memref<64x32xf32, #tpu.memory_space<vmem>>, vector<64x32xf32>
    %cst = arith.constant dense<0.000000e+00> : vector<16x64xf32>
    %2 = tpu.matmul %0, %1, %cst {dimension_numbers = #tpu.dot_dimension_numbers<[1], [1], [0], [0], [0, 0, 1, 0], [], []>} : vector<16x32xf32>, vector<64x32xf32>, vector<16x64xf32> -> vector<16x64xf32>
    %c0_3 = arith.constant 0 : index
    %c0_4 = arith.constant 0 : index
    %3 = vector.load %arg2[%c0_3, %c0_4] : memref<1x64xf32, #tpu.memory_space<vmem>>, vector<1x64xf32>
    %4 = vector.broadcast %3 : vector<1x64xf32> to vector<16x64xf32>
    %5 = arith.addf %2, %4 : vector<16x64xf32>
    %cst_5 = arith.constant 0.000000e+00 : f32
    %6 = vector.broadcast %cst_5 : f32 to vector<16x64xf32>
    %7 = arith.maximumf %5, %6 : vector<16x64xf32>
    %c0_6 = arith.constant 0 : index
    %c0_7 = arith.constant 0 : index
    %8 = vector.load %arg3[%c0_6, %c0_7] : memref<32x64xf32, #tpu.memory_space<vmem>>, vector<32x64xf32>
    %cst_8 = arith.constant dense<0.000000e+00> : vector<16x32xf32>
    %9 = tpu.matmul %7, %8, %cst_8 {dimension_numbers = #tpu.dot_dimension_numbers<[1], [1], [0], [0], [0, 0, 1, 0], [], []>} : vector<16x64xf32>, vector<32x64xf32>, vector<16x32xf32> -> vector<16x32xf32>
    %c0_9 = arith.constant 0 : index
    %c0_10 = arith.constant 0 : index
    %10 = vector.load %arg4[%c0_9, %c0_10] : memref<1x32xf32, #tpu.memory_space<vmem>>, vector<1x32xf32>
    %11 = vector.broadcast %10 : vector<1x32xf32> to vector<16x32xf32>
    %12 = arith.addf %9, %11 : vector<16x32xf32>
    %13 = arith.addf %0, %12 : vector<16x32xf32>
    %cst_11 = arith.constant dense<0.000000e+00> : vector<16xf32>
    %14 = vector.multi_reduction <add>, %13, %cst_11 [1] : vector<16x32xf32> to vector<16xf32>
    %15 = vector.shape_cast %14 : vector<16xf32> to vector<16x1xf32>
    %cst_12 = arith.constant 3.200000e+01 : f32
    %16 = vector.broadcast %cst_12 : f32 to vector<16x1xf32>
    %17 = arith.divf %15, %16 : vector<16x1xf32>
    %18 = vector.broadcast %17 : vector<16x1xf32> to vector<16x32xf32>
    %19 = arith.subf %13, %18 : vector<16x32xf32>
    %20 = arith.mulf %19, %19 : vector<16x32xf32>
    %cst_13 = arith.constant dense<0.000000e+00> : vector<16xf32>
    %21 = vector.multi_reduction <add>, %20, %cst_13 [1] : vector<16x32xf32> to vector<16xf32>
    %22 = vector.shape_cast %21 : vector<16xf32> to vector<16x1xf32>
    %cst_14 = arith.constant 3.200000e+01 : f32
    %23 = vector.broadcast %cst_14 : f32 to vector<16x1xf32>
    %24 = arith.divf %22, %23 : vector<16x1xf32>
    %cst_15 = arith.constant 9.99999974E-6 : f32
    %25 = vector.broadcast %cst_15 : f32 to vector<16x1xf32>
    %26 = arith.addf %24, %25 : vector<16x1xf32>
    %27 = math.rsqrt %26 : vector<16x1xf32>
    %28 = vector.broadcast %27 : vector<16x1xf32> to vector<16x32xf32>
    %29 = arith.mulf %19, %28 : vector<16x32xf32>
    %c0_16 = arith.constant 0 : index
    %c0_17 = arith.constant 0 : index
    %30 = vector.load %arg5[%c0_16, %c0_17] : memref<1x32xf32, #tpu.memory_space<vmem>>, vector<1x32xf32>
    %31 = vector.broadcast %30 : vector<1x32xf32> to vector<16x32xf32>
    %32 = arith.mulf %29, %31 : vector<16x32xf32>
    %c0_18 = arith.constant 0 : index
    %c0_19 = arith.constant 0 : index
    %33 = vector.load %arg6[%c0_18, %c0_19] : memref<1x32xf32, #tpu.memory_space<vmem>>, vector<1x32xf32>
    %34 = vector.broadcast %33 : vector<1x32xf32> to vector<16x32xf32>
    %35 = arith.addf %32, %34 : vector<16x32xf32>
    %c0_20 = arith.constant 0 : index
    %c0_21 = arith.constant 0 : index
    %36 = vector.load %arg7[%c0_20, %c0_21] : memref<16x32xf32, #tpu.memory_space<vmem>>, vector<16x32xf32>
    tpu.vector_store %arg7[%c0_20, %c0_21], %35 {strides = array<i32>} : memref<16x32xf32, #tpu.memory_space<vmem>>, vector<16x32xf32>,
    return
  }
}

</mosaic_0001>

<bundles_post_ra>
// kernel: tpu_custom_call.1
= control target key start
LH: loop header
LB: loop body
LE: loop exit
PB: predicated region body
PF: predicated region fallthrough
CT: control target
= control target key end

     0   :  { %vm44_vm0 = vcmask 261120   ;;  %vm163_vm2 = vcmask 523264   ;;  %s610_s0 = inlined_call_operand.vmem [shape: f32[16,32], index: 0, kind: input, shape index: {}]   ;;  %s611_s1 = inlined_call_operand.vmem [shape: f32[64,32], index: 1, kind: input, shape index: {}]   ;;  %s612_s2 = inlined_call_operand.vmem [shape: f32[1,64], index: 2, kind: input, shape index: {}]   ;;  %s613_s3 = inlined_call_operand.vmem [shape: f32[32,64], index: 3, kind: input, shape index: {}]   ;;  %s614_s4 = inlined_call_operand.vmem [shape: f32[1,32], index: 4, kind: input, shape index: {}]   ;;  %s615_s5 = inlined_call_operand.vmem [shape: f32[1,32], index: 5, kind: input, shape index: {}]   ;;  %s616_s6 = inlined_call_operand.vmem [shape: f32[1,32], index: 6, kind: input, shape index: {}]   ;;  %s617_s7 = inlined_call_operand.hbm [shape: f32[16,32], index: 7, kind: output, shape index: {}]  }
   0x1   :  { %v29_v0 = vld [vmem:[%s611_s1] sm:$0xff]  ;;  %v30_v1 = vld [vmem:[%s611_s1 + $0x8] sm:$0xff]  ;;  %v31_v2 = vld [vmem:[%s611_s1 + $0x10] sm:$0xff] }
   0x2   :  { %v388_v3 = vpack.c.bf16 %v30_v1, %v29_v0  ;;  %vm509_vm1 = vmpackc.low %vm44_vm0, %vm44_vm0  ;;  %v32_v5 = vld [vmem:[%s611_s1 + $0x18] sm:$0xff]  ;;  %v27_v7 = vld [vmem:[%s610_s0] sm:$0xff] }
   0x3   :  { %v394_v6 = vpack.c.bf16 %v32_v5, %v31_v2  ;;  %v152_v8 = vld [vmem:[%s613_s3] sm:$0xff]  ;;  %374 = vmatprep.mubr.msk.f32.mxu0 %vm44_vm0, %v27_v7  ;;  %v153_v9 = vld [vmem:[%s613_s3 + $0x8] sm:$0xff]  ;;  %vm532_vm3 = vmpackc.low %vm163_vm2, %vm163_vm2 }
   0x4   :  { %390 = vmatprep.subr.msk.bf16.mxu0 %vm509_vm1, %v388_v3  ;;  %v154_v11 = vld [vmem:[%s613_s3 + $0x10] sm:$0xff]  ;;  %v412_v12 = vpack.c.bf16 %v153_v9, %v152_v8  ;;  %v155_v13 = vld [vmem:[%s613_s3 + $0x18] sm:$0xff] }
   0x5   :  { %393 = vmatpush3.bf16.xpose.msk.msra.mxu0 %vm509_vm1, %v388_v3 }
   0x6   :  { %396 = vmatprep.subr.msk.bf16.mxu0 %vm509_vm1, %v394_v6 }
   0x7   :  { %12 = vsyncpa [#allocation3], 0  ;;  %v33_v14 = vld [vmem:[%s611_s1 + $0x20] sm:$0xff]  ;;  %v34_v15 = vld [vmem:[%s611_s1 + $0x28] sm:$0xff]  ;;  %v418_v16 = vpack.c.bf16 %v155_v13, %v154_v11  ;;  %414 = vmatprep.subr.msk.bf16.mxu1 %vm532_vm3, %v412_v12  ;;  %s455_s9 = smov [#allocation2]  }
   0x8   :  { %417 = vmatpush3.bf16.xpose.msk.msra.mxu1 %vm532_vm3, %v412_v12  ;;  %v400_v17 = vpack.c.bf16 %v34_v15, %v33_v14  ;;  %v35_v18 = vld [vmem:[%s611_s1 + $0x30] sm:$0xff]  ;;  %v36_v19 = vld [vmem:[%s611_s1 + $0x38] sm:$0xff]  ;;  %v28_v21 = vld [vmem:[%s610_s0 + $0x8] sm:$0xff]  ;;  %s311_s10 = sshll.u32 %s455_s9, 4  ;;  %s312_s10 = int_to_ptr.vmem [resolvable:$true] %s311_s10 }
   0x9   :  { %420 = vmatprep.subr.msk.bf16.mxu1 %vm532_vm3, %v418_v16  ;;  %v406_v20 = vpack.c.bf16 %v36_v19, %v35_v18  ;;  %v322_v22 = vld [vmem:[%s612_s2] ss:$0 sm:$0xff]  ;;  %s431_s11 = scalar_lea.vmem %s312_s10, 256  ;;  %p436_p1 = scmp.lt.s32.totalorder %s312_s10, %s312_s10 }
   0xa   :  { %v333_v29 = vld [vmem:[%s614_s4] ss:$0 sm:$0xff]  ;;  %p432_p0 = scmp.ne.s32.totalorder %s312_s10, %s431_s11  ;;  %p437_p2 = scmp.lt.s32.totalorder %s431_s11, %s431_s11 }
   0xb   :  { %v340_v55 = vld [vmem:[%s615_s5] ss:$0 sm:$0xff] }
   0xc   :  { %v341_v57 = vld [vmem:[%s616_s6] ss:$0 sm:$0xff]  ;;  %p438_p3 = por %p437_p2, %p436_p1 }
   0xd   :  { %399 = vmatpush3.bf16.xpose.msk.msra.mxu0 %vm509_vm1, %v394_v6 }
   0xe   :  { %402 = vmatprep.subr.msk.bf16.mxu0 %vm509_vm1, %v400_v17  ;;  %p439_p4 = pnand %p438_p3, %p432_p0 }
  0x10   :  { %423 = vmatpush3.bf16.xpose.msk.msra.mxu1 %vm532_vm3, %v418_v16 }
  0x15   :  { %405 = vmatpush3.bf16.xpose.msk.msra.mxu0 %vm509_vm1, %v400_v17 }
  0x16   :  { %408 = vmatprep.subr.msk.bf16.mxu0 %vm509_vm1, %v406_v20 }
  0x1d   :  { %411 = vmatpush3.bf16.xpose.msk.msra.mxu0 %vm509_vm1, %v406_v20 }
  0x24   :  { %375 = vmatmul.mubr.msk.f32.vlgmr.msra.gmra.mrb[0].mxu0 %vm44_vm0, %v28_v21 }
  0xf7   :  { %v376_v23 = vpop.f32.mrb[0].mxu0 }
  0xf8   :  { %v147_v24 = vadd.f32 %v376_v23, %v322_v22  ;;  %v141_v25 = vpop.f32.mrb[1].mxu0 }
  0xf9   :  { %v142_v26 = vadd.f32 %v322_v22, %v141_v25 }
  0xfa   :  { %v151_v28 = vmax.f32 %v147_v24, 0.0 }
  0xfb   :  { %v150_v27 = vmax.f32 %v142_v26, 0.0 }
  0xfd   :  { %385 = vmatprep.mubr.msk.f32.mxu1 %vm163_vm2, %v150_v27 }
  0xfe   :  { %386 = vmatmul.mubr.msk.f32.vlgmr.msra.gmra.mrb[0].mxu1 %vm163_vm2, %v151_v28 }
 0x1d1   :  { %v387_v30 = vpop.f32.mrb[0].mxu1 }
 0x1d2   :  { %v248_v31 = vpop.f32.mrb[1].mxu1  ;;  %v254_v32 = vadd.f32 %v387_v30, %v333_v29 }
 0x1d3   :  { %v249_v33 = vadd.f32 %v333_v29, %v248_v31 }
 0x1d4   :  { %v258_v36 = vadd.f32 %v254_v32, %v28_v21 }
 0x1d5   :  { %v257_v34 = vadd.f32 %v249_v33, %v27_v7 }
 0x1d6   :  { %v262_v37 = vsel %vm44_vm0, %v258_v36, 0.0 }
 0x1d7   :  { %v259_v35 = vsel %vm44_vm0, %v257_v34, 0.0 }
 0x1d8   :  { %260 = vadd.xlane.f32.xlu0 %v259_v35 }
 0x1dc   :  { %263 = vadd.xlane.f32.xlu0 %v262_v37 }
 0x265   :  { %v261_v38 = vpop.xlane.xlu0 %260 }
 0x266   :  { %v266_v39 = vmul.f32 0.03125, %v261_v38 }
 0x268   :  { %v268_v40 = vsub.f32 %v257_v34, %v266_v39 }
 0x269   :  { %v264_v41 = vpop.xlane.xlu0 %263 }
 0x26a   :  { %v267_v42 = vmul.f32 0.03125, %v264_v41  ;;  %v270_v43 = vmul.f32 %v268_v40, %v268_v40 }
 0x26c   :  { %v269_v44 = vsub.f32 %v258_v36, %v267_v42  ;;  %v272_v45 = vsel %vm44_vm0, %v270_v43, 0.0 }
 0x26d   :  { %273 = vadd.xlane.f32.xlu1 %v272_v45 }
 0x26e   :  { %v271_v46 = vmul.f32 %v269_v44, %v269_v44 }
 0x270   :  { %v275_v47 = vsel %vm44_vm0, %v271_v46, 0.0 }
 0x271   :  { %276 = vadd.xlane.f32.xlu1 %v275_v47 }
 0x2fa   :  { %v274_v48 = vpop.xlane.xlu1 %273 }
 0x2fb   :  { %v278_v49 = vmul.f32 0.03125, %v274_v48 }
 0x2fd   :  { %v280_v50 = vadd.f32 1e-05, %v278_v49 }
 0x2fe   :  { %v277_v51 = vpop.xlane.xlu1 %276 }
 0x2ff   :  { %427 = vrsqrt.f32 %v280_v50  ;;  %v279_v52 = vmul.f32 0.03125, %v277_v51 }
 0x301   :  { %v281_v53 = vadd.f32 1e-05, %v279_v52 }
 0x303   :  { %429 = vrsqrt.f32 %v281_v53 }
 0x309   :  { %v428_v54 = vpop.eup %427 }
 0x30a   :  { %v284_v56 = vmul.f32 %v428_v54, %v268_v40 }
 0x30c   :  { %v293_v58 = vmul.f32 %v340_v55, %v284_v56 }
 0x30d   :  { %v430_v59 = vpop.eup %429 }
 0x30e   :  { %v285_v60 = vmul.f32 %v430_v59, %v269_v44  ;;  %v302_v61 = vadd.f32 %v341_v57, %v293_v58 }
 0x310   :  { %v294_v62 = vmul.f32 %v340_v55, %v285_v60  ;;  %304 = vst.msk [vmem:[#allocation2] sm:$0xff] %vm44_vm0, %v302_v61 }
 0x312   :  { %v303_v63 = vadd.f32 %v341_v57, %v294_v62 }
 0x314   :  { %305 = vst.msk [vmem:[#allocation2 + $0x8] sm:$0xff] %vm44_vm0, %v303_v63 }
 0x315   :  { %442 = shalt.err (!%p439_p4)
}
 0x316   :  { %s443_s12 = scalar_lea.hbm %s617_s7, 256 }
 0x317   :  { %p444_p5 = scmp.ne.s32.totalorder %s617_s7, %s443_s12  ;;  %p447_p6 = scmp.lt.u32.totalorder %s443_s12, %s617_s7 }
 0x319   :  { %p449_p7 = pnand %p447_p6, %p444_p5 }
 0x31b   :  { %452 = shalt.err (!%p449_p7)
}
 0x31c   :  { %s456_s17 = smov 128   ;;  %s457_s18 = smov 8  }
 0x31d   :  { %317 = dma.vmem_to_hbm [thread:$0]  %s312_s10, 256, %s617_s7, [#allocation3], %s456_s17, %s456_s17, %s457_s18  }
 0x31e   :  { %453 = dma.done.wait [#allocation3], 256  }
 0x31f   :  { %454 = vsyncadd [#allocation3], 4294967040 }
 0x320   :  { %321 = vsyncpa [#allocation3], 1 }

</bundles_post_ra>
